<compile_context>
chip_gen: v7x
topology: tpu7x:2x2x1
jax: 0.10.0
libtpu: 0.0.40
codegen_flags: <defaults>
</compile_context>

<pallas_src>
import functools

import jax
import jax.numpy as jnp
from jax.experimental import pallas as pl
from jax.experimental.pallas import tpu as pltpu


NUM_CORES = 2   # leading "parallel" grid axis: shards across v7x's two TensorCores;
                # degenerates to a cheap 2-iteration outer loop on v5e/v6e.


def _round_up(x, m):
    return (x + m - 1) // m * m


def _cdiv(a, b):
    return -(-a // b)


# ---------------------------------------------------------------------------
# Kernel: per-core, sublane-parallel partial column sums over the batch.
# ---------------------------------------------------------------------------
def _partial_sums_kernel(*refs, tb, bits, batch, blocks_per_core, compute_unif):
    """grid = (NUM_CORES, blocks_per_core), semantics ("parallel", "arbitrary").

    out_ref block: (1, nrows*8, bits) f32 resident accumulator (one per core).
      sublane-group q (rows q*8:(q+1)*8) holds partial per-bit column sums of
        q=0: h  (raw, NOT tanh'd -- matches PyTorch triplet forward)
        q=1: tanh(h_pos)
        q=2: tanh(h_neg)
        q=last: (pp-tp)^2 + (pn-tn)^2
      (groups 0..2 exist only when compute_unif.)
    Ragged / fully-out-of-range tiles are masked against the true `batch`;
    no host-side padding copies are made.
    """
    if compute_unif:
        h_ref, hp_ref, hn_ref, pp_ref, pn_ref, tp_ref, tn_ref, out_ref = refs
    else:
        pp_ref, pn_ref, tp_ref, tn_ref, out_ref = refs

    i = pl.program_id(1)

    @pl.when(i == 0)
    def _init():
        out_ref[...] = jnp.zeros_like(out_ref)

    # Row-validity mask for this (possibly ragged / clamped) tile.
    blk = pl.program_id(0) * blocks_per_core + i
    rows = jax.lax.broadcasted_iota(jnp.int32, (tb, bits), 0) + blk * tb
    valid = rows < batch

    def colsum8(x):                       # (tb, bits) -> (8, bits), VPU adds only
        return jnp.sum(x.reshape(tb // 8, 8, bits), axis=0)

    def acc(q, val8):                     # 8-aligned sublane-group read-modify-write
        out_ref[0, q * 8:(q + 1) * 8, :] += val8

    # MSE partial sums (pos + neg folded; the common divisor B*N is applied later).
    d_pos = pp_ref[...].astype(jnp.float32) - tp_ref[...].astype(jnp.float32)
    d_neg = pn_ref[...].astype(jnp.float32) - tn_ref[...].astype(jnp.float32)
    sq = jnp.where(valid, d_pos * d_pos + d_neg * d_neg, 0.0)
    acc(3 if compute_unif else 0, colsum8(sq))

    if compute_unif:
        h_val = jnp.where(valid, h_ref[...].astype(jnp.float32), 0.0)
        hp_t = jnp.tanh(jnp.where(valid, hp_ref[...].astype(jnp.float32), 0.0))
        hn_t = jnp.tanh(jnp.where(valid, hn_ref[...].astype(jnp.float32), 0.0))
        acc(0, colsum8(h_val))
        acc(1, colsum8(hp_t))
        acc(2, colsum8(hn_t))


# ---------------------------------------------------------------------------
# Batch-tile selection: dtype-aware, largest tile that keeps the double-buffered
# input windows under a ~20 MiB budget (vmem_limit is raised to 32 MiB, which is
# safe on v5e/v6e (128 MiB physical) and v7x (64 MiB per TensorCore)).
# ---------------------------------------------------------------------------
def _pick_batch_tile(batch, bits, itemsize, n_streams, tile_rows=None,
                     vmem_budget_bytes=20 << 20):
    full = _round_up(batch, 8)
    if tile_rows is not None:
        return min(_round_up(int(tile_rows), 8), full)
    bytes_per_row = n_streams * 2 * bits * itemsize   # double-buffered input windows
    cap = max(8, (vmem_budget_bytes // max(bytes_per_row, 1)) // 8 * 8)
    return min(full, cap)


# ---------------------------------------------------------------------------
# Python wrapper
# ---------------------------------------------------------------------------
def loss_v1_triplet_forward(h, h_pos, h_neg,
                            prediction_pos, prediction_neg,
                            target_pos, target_neg,
                            model_weight,
                            uniform_frequency_weight,
                            independent_bit_weight,
                            margin=0.5,          # unused in forward (as in PyTorch)
                            tile_rows=None,
                            num_cores=NUM_CORES):
    batch, bits = prediction_pos.shape
    ufw = float(uniform_frequency_weight)
    ibw = float(independent_bit_weight)
    compute_unif = ufw > 0.0   # PyTorch: `if self.uniform_frequency_weight > 0`
    compute_orth = ibw > 0.0   # PyTorch: `if self.independent_bit_weight > 0`

    # Only stream what is actually needed (no DMA of h/h_pos/h_neg when ufw<=0).
    if compute_unif:
        acts = (h, h_pos, h_neg, prediction_pos, prediction_neg,
                target_pos, target_neg)
    else:
        acts = (prediction_pos, prediction_neg, target_pos, target_neg)
    n_streams = len(acts)
    nrows = 4 if compute_unif else 1
    itemsize = max(jnp.dtype(a.dtype).itemsize for a in acts)

    tb = _pick_batch_tile(batch, bits, itemsize, n_streams, tile_rows)
    num_blocks = _cdiv(batch, tb)
    blocks_per_core = _cdiv(num_blocks, num_cores)
    last_block = num_blocks - 1

    kernel = functools.partial(_partial_sums_kernel, tb=tb, bits=bits,
                               batch=batch, blocks_per_core=blocks_per_core,
                               compute_unif=compute_unif)

    def act_idx(c, i):
        # Clamp so a core's trailing (fully masked) steps re-read a valid block
        # instead of DMA'ing past the end of the array.
        return (jnp.minimum(c * blocks_per_core + i, last_block), 0)

    act_spec = pl.BlockSpec((tb, bits), act_idx)
    out_spec = pl.BlockSpec((1, nrows * 8, bits), lambda c, i: (c, 0, 0))

    cost = pl.CostEstimate(
        flops=(10 if compute_unif else 7) * batch * bits,
        transcendentals=(2 * batch * bits) if compute_unif else 0,
        bytes_accessed=n_streams * batch * bits * itemsize
                       + num_cores * nrows * 8 * bits * 4)

    partials = pl.pallas_call(
        kernel,
        out_shape=jax.ShapeDtypeStruct((num_cores, nrows * 8, bits), jnp.float32),
        grid_spec=pltpu.PrefetchScalarGridSpec(
            num_scalar_prefetch=0,
            grid=(num_cores, blocks_per_core),
            in_specs=[act_spec] * n_streams,
            out_specs=out_spec),
        compiler_params=pltpu.CompilerParams(
            dimension_semantics=("parallel", "arbitrary"),
            vmem_limit_bytes=32 << 20),
        cost_estimate=cost,
    )(*acts)

    # --- tiny scalar combine: merge per-core / per-sublane raw column sums, then
    #     apply the nonlinear abs + normalization + weighted total (a few hundred
    #     FLOPs of plain XLA). -------------------------------------------------
    colsums = partials.reshape(num_cores, nrows, 8, bits).sum(axis=(0, 2))
    pred = jnp.sum(colsums[nrows - 1]) * (1.0 / (batch * bits))
    if compute_unif:
        # (U(h)+U(tanh hp)+U(tanh hn))/3 = sum(|colsums|) / (3*B*N)
        unif = jnp.sum(jnp.abs(colsums[0:3])) * (1.0 / (3.0 * batch * bits))
    else:
        unif = jnp.float32(0.0)

    if compute_orth:
        # Orthogonality loss on the tiny last-Linear weight; kept as a plain XLA
        # matmul so it never sits on the streaming kernel's pipeline tail and the
        # weight is never DMA'd into the kernel.
        w = model_weight.astype(jnp.float32)
        w = w.reshape(w.shape[0], -1)
        gram = jax.lax.dot_general(
            w, w, dimension_numbers=(((1,), (1,)), ((), ())),
            preferred_element_type=jnp.float32)
        eye = jnp.eye(w.shape[0], dtype=jnp.float32)
        orth = jnp.sum(jnp.abs(gram - eye)) * (1.0 / model_weight.shape[0])
    else:
        orth = jnp.float32(0.0)

    total = pred + jnp.float32(ufw) * unif + jnp.float32(ibw) * orth
    return total, pred, unif, orth


# ---------------------------------------------------------------------------
# Pure-JAX reference (mirrors the PyTorch math, including the >0 gating).
# ---------------------------------------------------------------------------
def _reference(h, h_pos, h_neg, pp, pn, tp, tn, w, ufw, ibw):
    hp = jnp.tanh(h_pos)
    hn = jnp.tanh(h_neg)
    pred = jnp.mean((pp - tp) ** 2) + jnp.mean((pn - tn) ** 2)
    if ufw > 0:
        u = lambda x: jnp.mean(jnp.abs(jnp.mean(x, axis=0)))
        unif = (u(h) + u(hp) + u(hn)) / 3.0
    else:
        unif = jnp.float32(0.0)
    if ibw > 0:
        wf = w.reshape(w.shape[0], -1)
        sym = wf @ wf.T - jnp.eye(wf.shape[0], dtype=wf.dtype)
        orth = jnp.sum(jnp.abs(sym)) / w.shape[0]
    else:
        orth = jnp.float32(0.0)
    total = pred + ufw * unif + ibw * orth
    return total, pred, unif, orth


if __name__ == "__main__":
    key = jax.random.PRNGKey(0)
    ks = jax.random.split(key, 16)

    n = 128                 # num_bits
    out_f, in_f = 16, 32    # last Linear weight: [out_features, in_features]

    # deterministic synthetic "model" weight (list(model.parameters())[-2])
    model_weight = 0.1 * jax.random.normal(ks[15], (out_f, in_f), jnp.float32)

    def check(got, want, tag):
        for g, w_ in zip(got, want):
            assert jnp.allclose(g, w_, rtol=1e-5, atol=1e-5), (tag, g, w_)

    # --- case 1: small batch, one block per core ----------------------------
    b1 = 8
    a1 = [jax.random.normal(ks[i], (b1, n), jnp.float32) for i in range(7)]
    got1 = jax.block_until_ready(
        loss_v1_triplet_forward(*a1, model_weight, 0.5, 0.1))
    check(got1, _reference(*a1, model_weight, 0.5, 0.1), "case1")

    # --- case 2: ragged batch, multiple tiles per core (masked edge, no pad) -
    b2 = 20
    a2 = [jax.random.normal(ks[7 + i], (b2, n), jnp.float32) for i in range(7)]
    got2 = jax.block_until_ready(
        loss_v1_triplet_forward(*a2, model_weight, 0.5, 0.1, tile_rows=8))
    check(got2, _reference(*a2, model_weight, 0.5, 0.1), "case2")

    # --- case 3: uniform-frequency term disabled -> h/h_pos/h_neg not streamed
    got3 = jax.block_until_ready(
        loss_v1_triplet_forward(*a2, model_weight, 0.0, 0.1, tile_rows=8))
    check(got3, _reference(*a2, model_weight, 0.0, 0.1), "case3")

    print("KERNEL_OK")
</pallas_src>

<mosaic_0001>
module attributes {stable_mosaic.version = 11 : i64} {
  func.func @_partial_sums_kernel(%arg0: i32, %arg1: i32, %arg2: memref<8x128xf32, #tpu.memory_space<vmem>>, %arg3: memref<8x128xf32, #tpu.memory_space<vmem>>, %arg4: memref<8x128xf32, #tpu.memory_space<vmem>>, %arg5: memref<8x128xf32, #tpu.memory_space<vmem>>, %arg6: memref<8x128xf32, #tpu.memory_space<vmem>>, %arg7: memref<8x128xf32, #tpu.memory_space<vmem>>, %arg8: memref<8x128xf32, #tpu.memory_space<vmem>>, %arg9: memref<1x32x128xf32, #tpu.memory_space<vmem>>) attributes {dimension_semantics = [#tpu.dimension_semantics<parallel>, #tpu.dimension_semantics<arbitrary>], iteration_bounds = array<i64: 2, 1>, scalar_prefetch = 0 : i64, scratch_operands = 0 : i64, tpu.core_type = #tpu.core_type<tc>, window_params = [{transform_indices = @transform_0, window_bounds = array<i64: 8, 128>}, {transform_indices = @transform_1, window_bounds = array<i64: 8, 128>}, {transform_indices = @transform_2, window_bounds = array<i64: 8, 128>}, {transform_indices = @transform_3, window_bounds = array<i64: 8, 128>}, {transform_indices = @transform_4, window_bounds = array<i64: 8, 128>}, {transform_indices = @transform_5, window_bounds = array<i64: 8, 128>}, {transform_indices = @transform_6, window_bounds = array<i64: 8, 128>}, {transform_indices = @transform_7, window_bounds = array<i64: 1, 32, 128>}]} {
    %c0_i32 = arith.constant 0 : i32
    %0 = arith.cmpi eq, %arg1, %c0_i32 : i32
    %1 = arith.extui %0 : i1 to i32
    %c0_i32_0 = arith.constant 0 : i32
    %2 = arith.cmpi ne, %1, %c0_i32_0 : i32
    scf.if %2 {
      %cst_43 = arith.constant 0.000000e+00 : f32
      %65 = vector.broadcast %cst_43 : f32 to vector<1x32x128xf32>
      %c0_44 = arith.constant 0 : index
      %c0_45 = arith.constant 0 : index
      %c0_46 = arith.constant 0 : index
      %66 = vector.load %arg9[%c0_44, %c0_45, %c0_46] : memref<1x32x128xf32, #tpu.memory_space<vmem>>, vector<1x32x128xf32>
      tpu.vector_store %arg9[%c0_44, %c0_45, %c0_46], %65 {strides = array<i32>} : memref<1x32x128xf32, #tpu.memory_space<vmem>>, vector<1x32x128xf32>,
    } else {
    }
    %c1_i32 = arith.constant 1 : i32
    %3 = arith.muli %arg0, %c1_i32 : i32
    %4 = arith.addi %3, %arg1 : i32
    %5 = tpu.iota {dimensions = array<i32: 0>} : vector<8x128xi32>
    %c8_i32 = arith.constant 8 : i32
    %6 = arith.muli %4, %c8_i32 : i32
    %7 = vector.broadcast %6 : i32 to vector<8x128xi32>
    %8 = arith.addi %5, %7 : vector<8x128xi32>
    %c8_i32_1 = arith.constant 8 : i32
    %9 = vector.broadcast %c8_i32_1 : i32 to vector<8x128xi32>
    %10 = arith.cmpi slt, %8, %9 : vector<8x128xi32>
    %c0 = arith.constant 0 : index
    %c0_2 = arith.constant 0 : index
    %11 = vector.load %arg5[%c0, %c0_2] : memref<8x128xf32, #tpu.memory_space<vmem>>, vector<8x128xf32>
    %c0_3 = arith.constant 0 : index
    %c0_4 = arith.constant 0 : index
    %12 = vector.load %arg7[%c0_3, %c0_4] : memref<8x128xf32, #tpu.memory_space<vmem>>, vector<8x128xf32>
    %13 = arith.subf %11, %12 : vector<8x128xf32>
    %c0_5 = arith.constant 0 : index
    %c0_6 = arith.constant 0 : index
    %14 = vector.load %arg6[%c0_5, %c0_6] : memref<8x128xf32, #tpu.memory_space<vmem>>, vector<8x128xf32>
    %c0_7 = arith.constant 0 : index
    %c0_8 = arith.constant 0 : index
    %15 = vector.load %arg8[%c0_7, %c0_8] : memref<8x128xf32, #tpu.memory_space<vmem>>, vector<8x128xf32>
    %16 = arith.subf %14, %15 : vector<8x128xf32>
    %17 = arith.mulf %13, %13 : vector<8x128xf32>
    %18 = arith.mulf %16, %16 : vector<8x128xf32>
    %19 = arith.addf %17, %18 : vector<8x128xf32>
    %cst = arith.constant 0.000000e+00 : f32
    %20 = vector.broadcast %cst : f32 to vector<8x128xf32>
    %21 = arith.select %10, %19, %20 : vector<8x128xi1>, vector<8x128xf32>
    %22 = vector.shape_cast %21 : vector<8x128xf32> to vector<1x8x128xf32>
    %cst_9 = arith.constant dense<0.000000e+00> : vector<8x128xf32>
    %23 = vector.multi_reduction <add>, %22, %cst_9 [0] : vector<1x8x128xf32> to vector<8x128xf32>
    %c0_10 = arith.constant 0 : index
    %c24 = arith.constant 24 : index
    %c0_11 = arith.constant 0 : index
    %24 = vector.load %arg9[%c0_10, %c24, %c0_11] : memref<1x32x128xf32, #tpu.memory_space<vmem>>, vector<1x8x128xf32>
    %25 = vector.shape_cast %24 : vector<1x8x128xf32> to vector<8x128xf32>
    %26 = arith.addf %25, %23 : vector<8x128xf32>
    %c0_12 = arith.constant 0 : index
    %c24_13 = arith.constant 24 : index
    %c0_14 = arith.constant 0 : index
    %27 = vector.load %arg9[%c0_12, %c24_13, %c0_14] : memref<1x32x128xf32, #tpu.memory_space<vmem>>, vector<1x8x128xf32>
    %28 = vector.shape_cast %27 : vector<1x8x128xf32> to vector<8x128xf32>
    %29 = vector.shape_cast %26 : vector<8x128xf32> to vector<1x8x128xf32>
    tpu.vector_store %arg9[%c0_12, %c24_13, %c0_14], %29 {strides = array<i32>} : memref<1x32x128xf32, #tpu.memory_space<vmem>>, vector<1x8x128xf32>,
    %c0_15 = arith.constant 0 : index
    %c0_16 = arith.constant 0 : index
    %30 = vector.load %arg2[%c0_15, %c0_16] : memref<8x128xf32, #tpu.memory_space<vmem>>, vector<8x128xf32>
    %cst_17 = arith.constant 0.000000e+00 : f32
    %31 = vector.broadcast %cst_17 : f32 to vector<8x128xf32>
    %32 = arith.select %10, %30, %31 : vector<8x128xi1>, vector<8x128xf32>
    %c0_18 = arith.constant 0 : index
    %c0_19 = arith.constant 0 : index
    %33 = vector.load %arg3[%c0_18, %c0_19] : memref<8x128xf32, #tpu.memory_space<vmem>>, vector<8x128xf32>
    %cst_20 = arith.constant 0.000000e+00 : f32
    %34 = vector.broadcast %cst_20 : f32 to vector<8x128xf32>
    %35 = arith.select %10, %33, %34 : vector<8x128xi1>, vector<8x128xf32>
    %36 = math.tanh %35 : vector<8x128xf32>
    %c0_21 = arith.constant 0 : index
    %c0_22 = arith.constant 0 : index
    %37 = vector.load %arg4[%c0_21, %c0_22] : memref<8x128xf32, #tpu.memory_space<vmem>>, vector<8x128xf32>
    %cst_23 = arith.constant 0.000000e+00 : f32
    %38 = vector.broadcast %cst_23 : f32 to vector<8x128xf32>
    %39 = arith.select %10, %37, %38 : vector<8x128xi1>, vector<8x128xf32>
    %40 = math.tanh %39 : vector<8x128xf32>
    %41 = vector.shape_cast %32 : vector<8x128xf32> to vector<1x8x128xf32>
    %cst_24 = arith.constant dense<0.000000e+00> : vector<8x128xf32>
    %42 = vector.multi_reduction <add>, %41, %cst_24 [0] : vector<1x8x128xf32> to vector<8x128xf32>
    %c0_25 = arith.constant 0 : index
    %c0_26 = arith.constant 0 : index
    %c0_27 = arith.constant 0 : index
    %43 = vector.load %arg9[%c0_25, %c0_26, %c0_27] : memref<1x32x128xf32, #tpu.memory_space<vmem>>, vector<1x8x128xf32>
    %44 = vector.shape_cast %43 : vector<1x8x128xf32> to vector<8x128xf32>
    %45 = arith.addf %44, %42 : vector<8x128xf32>
    %c0_28 = arith.constant 0 : index
    %c0_29 = arith.constant 0 : index
    %c0_30 = arith.constant 0 : index
    %46 = vector.load %arg9[%c0_28, %c0_29, %c0_30] : memref<1x32x128xf32, #tpu.memory_space<vmem>>, vector<1x8x128xf32>
    %47 = vector.shape_cast %46 : vector<1x8x128xf32> to vector<8x128xf32>
    %48 = vector.shape_cast %45 : vector<8x128xf32> to vector<1x8x128xf32>
    tpu.vector_store %arg9[%c0_28, %c0_29, %c0_30], %48 {strides = array<i32>} : memref<1x32x128xf32, #tpu.memory_space<vmem>>, vector<1x8x128xf32>,
    %49 = vector.shape_cast %36 : vector<8x128xf32> to vector<1x8x128xf32>
    %cst_31 = arith.constant dense<0.000000e+00> : vector<8x128xf32>
    %50 = vector.multi_reduction <add>, %49, %cst_31 [0] : vector<1x8x128xf32> to vector<8x128xf32>
    %c0_32 = arith.constant 0 : index
    %c8 = arith.constant 8 : index
    %c0_33 = arith.constant 0 : index
    %51 = vector.load %arg9[%c0_32, %c8, %c0_33] : memref<1x32x128xf32, #tpu.memory_space<vmem>>, vector<1x8x128xf32>
    %52 = vector.shape_cast %51 : vector<1x8x128xf32> to vector<8x128xf32>
    %53 = arith.addf %52, %50 : vector<8x128xf32>
    %c0_34 = arith.constant 0 : index
    %c8_35 = arith.constant 8 : index
    %c0_36 = arith.constant 0 : index
    %54 = vector.load %arg9[%c0_34, %c8_35, %c0_36] : memref<1x32x128xf32, #tpu.memory_space<vmem>>, vector<1x8x128xf32>
    %55 = vector.shape_cast %54 : vector<1x8x128xf32> to vector<8x128xf32>
    %56 = vector.shape_cast %53 : vector<8x128xf32> to vector<1x8x128xf32>
    tpu.vector_store %arg9[%c0_34, %c8_35, %c0_36], %56 {strides = array<i32>} : memref<1x32x128xf32, #tpu.memory_space<vmem>>, vector<1x8x128xf32>,
    %57 = vector.shape_cast %40 : vector<8x128xf32> to vector<1x8x128xf32>
    %cst_37 = arith.constant dense<0.000000e+00> : vector<8x128xf32>
    %58 = vector.multi_reduction <add>, %57, %cst_37 [0] : vector<1x8x128xf32> to vector<8x128xf32>
    %c0_38 = arith.constant 0 : index
    %c16 = arith.constant 16 : index
    %c0_39 = arith.constant 0 : index
    %59 = vector.load %arg9[%c0_38, %c16, %c0_39] : memref<1x32x128xf32, #tpu.memory_space<vmem>>, vector<1x8x128xf32>
    %60 = vector.shape_cast %59 : vector<1x8x128xf32> to vector<8x128xf32>
    %61 = arith.addf %60, %58 : vector<8x128xf32>
    %c0_40 = arith.constant 0 : index
    %c16_41 = arith.constant 16 : index
    %c0_42 = arith.constant 0 : index
    %62 = vector.load %arg9[%c0_40, %c16_41, %c0_42] : memref<1x32x128xf32, #tpu.memory_space<vmem>>, vector<1x8x128xf32>
    %63 = vector.shape_cast %62 : vector<1x8x128xf32> to vector<8x128xf32>
    %64 = vector.shape_cast %61 : vector<8x128xf32> to vector<1x8x128xf32>
    tpu.vector_store %arg9[%c0_40, %c16_41, %c0_42], %64 {strides = array<i32>} : memref<1x32x128xf32, #tpu.memory_space<vmem>>, vector<1x8x128xf32>,
    return
  }
  func.func @transform_0(%arg0: i32, %arg1: i32) -> (i32, i32) {
    %c1_i32 = arith.constant 1 : i32
    %0 = arith.muli %arg0, %c1_i32 : i32
    %1 = arith.addi %0, %arg1 : i32
    %c0_i32 = arith.constant 0 : i32
    %2 = arith.minsi %1, %c0_i32 : i32
    %c0_i32_0 = arith.constant 0 : i32
    %c0_i32_1 = arith.constant 0 : i32
    return %2, %c0_i32_0 : i32, i32
  }
  func.func @transform_1(%arg0: i32, %arg1: i32) -> (i32, i32) {
    %c1_i32 = arith.constant 1 : i32
    %0 = arith.muli %arg0, %c1_i32 : i32
    %1 = arith.addi %0, %arg1 : i32
    %c0_i32 = arith.constant 0 : i32
    %2 = arith.minsi %1, %c0_i32 : i32
    %c0_i32_0 = arith.constant 0 : i32
    %c0_i32_1 = arith.constant 0 : i32
    return %2, %c0_i32_0 : i32, i32
  }
  func.func @transform_2(%arg0: i32, %arg1: i32) -> (i32, i32) {
    %c1_i32 = arith.constant 1 : i32
    %0 = arith.muli %arg0, %c1_i32 : i32
    %1 = arith.addi %0, %arg1 : i32
    %c0_i32 = arith.constant 0 : i32
    %2 = arith.minsi %1, %c0_i32 : i32
    %c0_i32_0 = arith.constant 0 : i32
    %c0_i32_1 = arith.constant 0 : i32
    return %2, %c0_i32_0 : i32, i32
  }
  func.func @transform_3(%arg0: i32, %arg1: i32) -> (i32, i32) {
    %c1_i32 = arith.constant 1 : i32
    %0 = arith.muli %arg0, %c1_i32 : i32
    %1 = arith.addi %0, %arg1 : i32
    %c0_i32 = arith.constant 0 : i32
    %2 = arith.minsi %1, %c0_i32 : i32
    %c0_i32_0 = arith.constant 0 : i32
    %c0_i32_1 = arith.constant 0 : i32
    return %2, %c0_i32_0 : i32, i32
  }
  func.func @transform_4(%arg0: i32, %arg1: i32) -> (i32, i32) {
    %c1_i32 = arith.constant 1 : i32
    %0 = arith.muli %arg0, %c1_i32 : i32
    %1 = arith.addi %0, %arg1 : i32
    %c0_i32 = arith.constant 0 : i32
    %2 = arith.minsi %1, %c0_i32 : i32
    %c0_i32_0 = arith.constant 0 : i32
    %c0_i32_1 = arith.constant 0 : i32
    return %2, %c0_i32_0 : i32, i32
  }
  func.func @transform_5(%arg0: i32, %arg1: i32) -> (i32, i32) {
    %c1_i32 = arith.constant 1 : i32
    %0 = arith.muli %arg0, %c1_i32 : i32
    %1 = arith.addi %0, %arg1 : i32
    %c0_i32 = arith.constant 0 : i32
    %2 = arith.minsi %1, %c0_i32 : i32
    %c0_i32_0 = arith.constant 0 : i32
    %c0_i32_1 = arith.constant 0 : i32
    return %2, %c0_i32_0 : i32, i32
  }
  func.func @transform_6(%arg0: i32, %arg1: i32) -> (i32, i32) {
    %c1_i32 = arith.constant 1 : i32
    %0 = arith.muli %arg0, %c1_i32 : i32
    %1 = arith.addi %0, %arg1 : i32
    %c0_i32 = arith.constant 0 : i32
    %2 = arith.minsi %1, %c0_i32 : i32
    %c0_i32_0 = arith.constant 0 : i32
    %c0_i32_1 = arith.constant 0 : i32
    return %2, %c0_i32_0 : i32, i32
  }
  func.func @transform_7(%arg0: i32, %arg1: i32) -> (i32, i32, i32) {
    %c0_i32 = arith.constant 0 : i32
    %c0_i32_0 = arith.constant 0 : i32
    %c0_i32_1 = arith.constant 0 : i32
    return %arg0, %c0_i32, %c0_i32_0 : i32, i32, i32
  }
}

</mosaic_0001>

<bundles_post_ra>
// kernel: tpu_custom_call.1
= control target key start
LH: loop header
LB: loop body
LE: loop exit
PB: predicated region body
PF: predicated region fallthrough
CT: control target
= control target key end

     0   :  { %s1602_s0 = inlined_call_operand.hbm [shape: f32[8,128], index: 0, kind: input, shape index: {}]   ;;  %s1603_s1 = inlined_call_operand.hbm [shape: f32[8,128], index: 1, kind: input, shape index: {}]   ;;  %s1604_s2 = inlined_call_operand.hbm [shape: f32[8,128], index: 2, kind: input, shape index: {}]   ;;  %s1605_s3 = inlined_call_operand.vmem [shape: f32[8,128], index: 3, kind: input, shape index: {}]   ;;  %s1606_s4 = inlined_call_operand.hbm [shape: f32[8,128], index: 4, kind: input, shape index: {}]   ;;  %s1607_s5 = inlined_call_operand.vmem [shape: f32[8,128], index: 5, kind: input, shape index: {}]   ;;  %s1608_s6 = inlined_call_operand.hbm [shape: f32[8,128], index: 6, kind: input, shape index: {}]   ;;  %s1609_s7 = inlined_call_operand.hbm [shape: f32[2,32,128], index: 7, kind: output, shape index: {}]  }
   0x1   :  { %1621 = sst [smem:[#allocation22_spill]] %s1603_s1 }
   0x2   :  { %12 = vsyncpa [#allocation3], 0 }
   0x3   :  { %14 = vsyncpa [#allocation3 + $0x1], 0 }
   0x4   :  { %15 = vsyncpa [#allocation6], 0 }
   0x5   :  { %17 = vsyncpa [#allocation6 + $0x1], 0 }
   0x6   :  { %18 = vsyncpa [#allocation9], 0 }
   0x7   :  { %20 = vsyncpa [#allocation9 + $0x1], 0 }
   0x8   :  { %21 = vsyncpa [#allocation4], 0 }
   0x9   :  { %23 = vsyncpa [#allocation4 + $0x1], 0  ;;  %s1298_s24 = smov 0   ;;  %s1300_s25 = smov 0  }
   0xa   :  { %s1302_s26 = smov 0   ;;  %s1304_s27 = smov 0  }
   0xb   :  { %s1306_s28 = smov 0   ;;  %s1308_s29 = smov 0  }
   0xc   :  { %s1310_s30 = smov 0   ;;  %s1312_s8 = smov 0  }
   0xd LB: > { %1622 = sst [smem:[#allocation16_spill]] %s1228_s26  ;;  %s1337_s9 = sadd.s32 4294967295, %s1248_s8   ;;  %s1248_s8 = sphi %s1312_s8, %s29_s8   ;;  %s1244_s30 = sphi %s1310_s30, %s1653_s30   ;;  %s1240_s29 = sphi %s1308_s29, %s1652_s29   ;;  %s1236_s28 = sphi %s1306_s28, %s1592_s28   ;;  %s1232_s27 = sphi %s1304_s27, %s1656_s27   ;;  %s1228_s26 = sphi %s1302_s26, %s1651_s26   ;;  %s1224_s25 = sphi %s1300_s25, %s1655_s25   ;;  %s1220_s24 = sphi %s1298_s24, %s1654_s24  }
   0xe   : > { %1623 = sst [smem:[#allocation17_spill]] %s1244_s30  ;;  %s839_s10 = sadd.s32 4294967294, %s1248_s8  }
   0xf   : > { %1624 = sst [smem:[#allocation18_spill]] %s1248_s8  ;;  %s41_s11 = sadd.s32 1, %s1244_s30 }
  0x10   : > { %p43_p0 = scmp.ge.s32.totalorder %s41_s11, 2  ;;  %p1217_p1 = scmp.ne.s32.totalorder %s1236_s28, 0 }
  0x11   : > { %p62_p2 = scmp.eq.s32.totalorder %s1248_s8, 0  ;;  %p67_p3 = scmp.ne.s32.totalorder %s1236_s28, %s1232_s27 }
  0x12   : > { %s1658_s11 = smov (%p43_p0, %s41_s11), 0  ;;  %p68_p5 = scmp.eq.s32.totalorder %s1337_s9, 0 }
  0x13   : > { %1625 = sst [smem:[#allocation19_spill]] %s1658_s11  ;;  %p1346_p4 = por %p1217_p1, %p62_p2 }
  0x14   : > { %p1351_p6 = por %p68_p5, %p67_p3  ;;  %s269_s14 = ssub.s32 %s1244_s30, %s1658_s11 }
  0x15   : > { %p270_p7 = scmp.eq.s32.totalorder %s269_s14, 0  ;;  %s272_s15 = sadd.s32 1, %s1228_s26 }
  0x16   : > { %s1627_s13 = scalar_select %p1351_p6, 1, 0 }
  0x17   : > { %s1359_s16 = scalar_select %p270_p7, %s1228_s26, %s272_s15  }
  0x18   : > { %p282_p8 = scmp.ne.s32.totalorder %s1228_s26, %s1224_s25  ;;  %p283_p9 = scmp.eq.s32.totalorder %s1337_s9, 1 }
  0x19   : > { %1628 = sst [smem:[#allocation20_spill]] %s1359_s16  ;;  %p288_p10 = scmp.ne.s32.totalorder %s1224_s25, %s1220_s24 }
  0x1a   : > { %p289_p11 = scmp.eq.s32.totalorder %s839_s10, 1  ;;  %p1366_p12 = por %p283_p9, %p282_p8 }
  0x1b   : > { %p906_p1 = scmp.lt.s32.totalorder %s1248_s8, 2  ;;  %s1611_s20 = sand.u32 1, %s1248_s8  }
  0x1c   : > { %s1629_s17 = scalar_select %p1366_p12, 1, 0 }
  0x1d   : > { %p1371_p0 = por %p289_p11, %p288_p10  ;;  %p1378_p2 = pnand %p906_p1, %p1346_p4 }
  0x1e   : > { %s1250_s21 = smov [#allocation5]   ;;  %s1386_s23 = scalar_lea.sflag [#allocation6], %s1611_s20 }
  0x1f   : > { %s1630_s18 = scalar_select %p1371_p0, 1, 0 }
  0x20   : > { %s1632_s19 = scalar_select %p1378_p2, 1, 0 }
  0x21   : > { %1631 = sst [smem:[#allocation21_spill]] %s1630_s18  ;;  %s344_s22 = sshll.u32 %s1250_s21, 4  ;;  %s345_s22 = int_to_ptr.vmem [resolvable:$true] %s344_s22 }
  0x22   : > { %s1633_s1 = sld [smem:[#allocation22_spill]]  ;;  %p1396_p5 = pneg %p1378_p2 }
  0x28   : > { %s987_s14 = scalar_lea.hbm %s1633_s1, 128 }
  0x29   : > { %p988_p4 = scmp.ne.s32.totalorder %s1633_s1, %s987_s14  ;;  %p994_p9 = scmp.lt.u32.totalorder %s987_s14, %s987_s14 }
  0x2a   : > { %p996_p10 = scmp.lt.u32.totalorder %s987_s14, %s1633_s1 }
  0x2b   : > { %p990_p7 = pnand %p1396_p5, %p988_p4 }
  0x2c   : > { %p997_p11 = por %p996_p10, %p994_p9 }
  0x2d   : > { %p991_p8 = pneg %p990_p7 }
  0x2f   : > { %p998_p1 = pnand %p997_p11, %p991_p8 }
  0x31   : > { %1001 = shalt.err (!%p998_p1)
}
  0x32   : > { %s1002_s27 = scalar_lea.vmem %s345_s22, 128  ;;  %s1009_s11 = scalar_lea.vmem %s345_s22, 256 }
  0x33   : > { %p1003_p13 = scmp.ne.s32.totalorder %s345_s22, %s1002_s27  ;;  %p1010_p12 = scmp.lt.s32.totalorder %s345_s22, %s345_s22 }
  0x34   : > { %p1011_p6 = scmp.lt.s32.totalorder %s1009_s11, %s1002_s27 }
  0x35   : > { %p1005_p3 = pnand %p1003_p13, %p1396_p5 }
  0x36   : > { %p1012_p2 = por %p1011_p6, %p1010_p12 }
  0x37   : > { %p1006_p0 = pneg %p1005_p3 }
  0x39   : > { %p1013_p4 = pnand %p1012_p2, %p1006_p0 }
  0x3b   : > { %1016 = shalt.err (!%p1013_p4)
}
  0x3c   : > { %p1635_p7 = scmp.ne.s32.totalorder %s1632_s19, 0  ;;  %p438_p8 = scmp.lt.s32.totalorder %s1248_s8, 3 }
  0x3d   : > { %p1636_p13 = scmp.ge.s32.totalorder %s1248_s8, 1  ;;  %s1251_s15 = smov [#allocation8]  }
  0x3e   : > { %892 = dma.hbm_to_vmem [thread:$0]  (!%p1635_p7), %s1633_s1, 128, %s345_s22, %s1386_s23  }
  0x3f   : > { %p1416_p3 = pnand %p1636_p13, %p438_p8  ;;  %s399_s21 = sshll.u32 %s1251_s15, 4  ;;  %s400_s21 = int_to_ptr.vmem [resolvable:$true] %s399_s21 }
  0x40   : > { %s1638_s27 = sand.u32 1, %s1248_s8   ;;  %s1017_s20 = scalar_lea.hbm %s1606_s4, 128 }
  0x41   : > { %s1637_s14 = scalar_select %p1416_p3, 1, 0 }
  0x42   : > { %s1422_s11 = scalar_lea.sflag [#allocation9], %s1638_s27  ;;  %p1018_p6 = scmp.ne.s32.totalorder %s1606_s4, %s1017_s20 }
  0x43   : > { %p1024_p2 = scmp.lt.u32.totalorder %s1017_s20, %s1017_s20  ;;  %p1026_p9 = scmp.lt.u32.totalorder %s1017_s20, %s1606_s4 }
  0x44   : > { %p1020_p12 = pnand %p1018_p6, %p1396_p5 }
  0x45   : > { %p1027_p10 = por %p1026_p9, %p1024_p2 }
  0x46   : > { %p1021_p0 = pneg %p1020_p12 }
  0x48   : > { %p1028_p11 = pnand %p1027_p10, %p1021_p0 }
  0x4a   : > { %1031 = shalt.err (!%p1028_p11)
}
  0x4b   : > { %s1032_s15 = scalar_lea.vmem %s400_s21, 128  ;;  %s1039_s30 = scalar_lea.vmem %s400_s21, 256 }
  0x4c   : > { %p1033_p1 = scmp.ne.s32.totalorder %s400_s21, %s1032_s15  ;;  %p1040_p13 = scmp.lt.s32.totalorder %s400_s21, %s400_s21 }
  0x4d   : > { %p1041_p3 = scmp.lt.s32.totalorder %s1039_s30, %s1032_s15 }
  0x4e   : > { %p1035_p4 = pnand %p1033_p1, %p1396_p5 }
  0x4f   : > { %p1042_p7 = por %p1041_p3, %p1040_p13 }
  0x50   : > { %p1036_p8 = pneg %p1035_p4 }
  0x52   : > { %p1043_p6 = pnand %p1042_p7, %p1036_p8 }
  0x54   : > { %1046 = shalt.err (!%p1043_p6)
}
  0x55   : > { %p1639_p12 = scmp.ne.s32.totalorder %s1632_s19, 0  ;;  %s1252_s16 = smov [#allocation2]  }
  0x56   : > { %s323_s27 = sshll.u32 %s1252_s16, 4  ;;  %s1047_s22 = scalar_lea.hbm %s1602_s0, 128  ;;  %s324_s27 = int_to_ptr.vmem [resolvable:$true] %s323_s27 }
  0x57   : > { %898 = dma.hbm_to_vmem [thread:$0]  (!%p1639_p12), %s1606_s4, 128, %s400_s21, %s1422_s11  }
  0x58   : > { %p1048_p7 = scmp.ne.s32.totalorder %s1602_s0, %s1047_s22  ;;  %p1054_p2 = scmp.lt.u32.totalorder %s1047_s22, %s1047_s22 }
  0x59   : > { %p1056_p9 = scmp.lt.u32.totalorder %s1047_s22, %s1602_s0 }
  0x5a   : > { %p1050_p3 = pnand %p1048_p7, %p1396_p5 }
  0x5b   : > { %p1057_p10 = por %p1056_p9, %p1054_p2 }
  0x5c   : > { %p1051_p0 = pneg %p1050_p3 }
  0x5e   : > { %p1058_p11 = pnand %p1057_p10, %p1051_p0 }
  0x60   : > { %1061 = shalt.err (!%p1058_p11)
}
  0x61   : > { %s1062_s21 = scalar_lea.vmem %s324_s27, 128  ;;  %s1069_s1 = scalar_lea.vmem %s324_s27, 256 }
  0x62   : > { %p1063_p1 = scmp.ne.s32.totalorder %s324_s27, %s1062_s21  ;;  %p1070_p13 = scmp.lt.s32.totalorder %s324_s27, %s324_s27 }
  0x63   : > { %p1071_p6 = scmp.lt.s32.totalorder %s1069_s1, %s1062_s21 }
  0x64   : > { %p1065_p4 = pnand %p1063_p1, %p1396_p5 }
  0x65   : > { %p1072_p12 = por %p1071_p6, %p1070_p13 }
  0x66   : > { %p1066_p8 = pneg %p1065_p4 }
  0x68   : > { %p1073_p7 = pnand %p1072_p12, %p1066_p8 }
  0x6a   : > { %1076 = shalt.err (!%p1073_p7)
}
  0x6b   : > { %p1640_p3 = scmp.ne.s32.totalorder %s1632_s19, 0  ;;  %s1253_s26 = smov [#allocation7]  }
  0x6c   : > { %s365_s16 = sshll.u32 %s1253_s26, 4  ;;  %s1077_s22 = scalar_lea.hbm %s1604_s2, 128  ;;  %s366_s16 = int_to_ptr.vmem [resolvable:$true] %s365_s16 }
  0x6d   : > { %889 = dma.hbm_to_vmem [thread:$0]  (!%p1640_p3), %s1602_s0, 128, %s324_s27, [#allocation3]  }
  0x6e   : > { %p1078_p0 = scmp.ne.s32.totalorder %s1604_s2, %s1077_s22  ;;  %p1084_p9 = scmp.lt.u32.totalorder %s1077_s22, %s1077_s22 }
  0x6f   : > { %p1086_p10 = scmp.lt.u32.totalorder %s1077_s22, %s1604_s2 }
  0x70   : > { %p1080_p12 = pnand %p1078_p0, %p1396_p5 }
  0x71   : > { %p1087_p11 = por %p1086_p10, %p1084_p9 }
  0x72   : > { %p1081_p2 = pneg %p1080_p12 }
  0x74   : > { %p1088_p1 = pnand %p1087_p11, %p1081_p2 }
  0x76   : > { %1091 = shalt.err (!%p1088_p1)
}
  0x77   : > { %s1092_s27 = scalar_lea.vmem %s366_s16, 128  ;;  %s1099_s8 = scalar_lea.vmem %s366_s16, 256 }
  0x78   : > { %p1093_p4 = scmp.ne.s32.totalorder %s366_s16, %s1092_s27  ;;  %p1100_p6 = scmp.lt.s32.totalorder %s366_s16, %s366_s16 }
  0x79   : > { %p1101_p7 = scmp.lt.s32.totalorder %s1099_s8, %s1092_s27 }
  0x7a   : > { %p1095_p8 = pnand %p1093_p4, %p1396_p5 }
  0x7b   : > { %p1102_p3 = por %p1101_p7, %p1100_p6 }
  0x7c   : > { %p1096_p13 = pneg %p1095_p8 }
  0x7e   : > { %p1103_p0 = pnand %p1102_p3, %p1096_p13 }
  0x80   : > { %1106 = shalt.err (!%p1103_p0)
}
  0x81   : > { %p1641_p12 = scmp.ne.s32.totalorder %s1632_s19, 0  ;;  %s1254_s20 = smov [#allocation10]  }
  0x82   : > { %s433_s10 = sshll.u32 %s1254_s20, 4  ;;  %s1107_s30 = scalar_lea.hbm %s1608_s6, 128  ;;  %s434_s10 = int_to_ptr.vmem [resolvable:$true] %s433_s10 }
  0x83   : > { %895 = dma.hbm_to_vmem [thread:$0]  (!%p1641_p12), %s1604_s2, 128, %s366_s16, %s1386_s23  }
  0x84   : > { %p1108_p3 = scmp.ne.s32.totalorder %s1608_s6, %s1107_s30  ;;  %p1114_p10 = scmp.lt.u32.totalorder %s1107_s30, %s1107_s30 }
  0x85   : > { %p1116_p11 = scmp.lt.u32.totalorder %s1107_s30, %s1608_s6 }
  0x86   : > { %p1110_p2 = pnand %p1108_p3, %p1396_p5 }
  0x87   : > { %p1117_p1 = por %p1116_p11, %p1114_p10 }
  0x88   : > { %p1111_p9 = pneg %p1110_p2 }
  0x8a   : > { %p1118_p4 = pnand %p1117_p1, %p1111_p9 }
  0x8c   : > { %1121 = shalt.err (!%p1118_p4)
}
  0x8d   : > { %s1122_s23 = scalar_lea.vmem %s434_s10, 128  ;;  %s1129_s16 = scalar_lea.vmem %s434_s10, 256 }
  0x8e   : > { %p1123_p8 = scmp.ne.s32.totalorder %s434_s10, %s1122_s23  ;;  %p1130_p7 = scmp.lt.s32.totalorder %s434_s10, %s434_s10 }
  0x8f   : > { %p1131_p0 = scmp.lt.s32.totalorder %s1129_s16, %s1122_s23 }
  0x90   : > { %p1125_p13 = pnand %p1123_p8, %p1396_p5 }
  0x91   : > { %p1132_p12 = por %p1131_p0, %p1130_p7 }
  0x92   : > { %p1126_p6 = pneg %p1125_p13 }
  0x94   : > { %p1133_p3 = pnand %p1132_p12, %p1126_p6 }
  0x96   : > { %1136 = shalt.err (!%p1133_p3)
}
  0x97   : > { %p1642_p2 = scmp.ne.s32.totalorder %s1632_s19, 0  ;;  %p1643_p9 = scmp.ne.s32.totalorder %s1637_s14, 0 }
  0x98   : > { %s444_s12 = sand.u32 (!%p1643_p9), 1, %s1236_s28   ;;  %p1644_p5 = scmp.ne.s32.totalorder (!%p1643_p9), %s1627_s13, 0 }
  0x99   : > { %901 = dma.hbm_to_vmem [thread:$0]  (!%p1642_p2), %s1608_s6, 128, %s434_s10, %s1422_s11  }
  0x9a   : > { %442 = sbr.rel (%p1643_p9) target bundleno = 203 (0xcb), region = 48  ;;  %s1502_s20 = sshll.u32 (!%p1643_p9), %s444_s12, 3 }
  0x9b   : > { %s445_s22 = scalar_lea.sflag (!%p1643_p9), [#allocation3], %s444_s12  ;;  %s448_s15 = scalar_lea.vmem (!%p1643_p9), [#allocation2], %s1502_s20 }
  0xa1   : > { %1202 = dma.done.wait (%p1644_p5), %s445_s22, 128  }
  0xa2   : > { %1204 = vsyncadd (%p1644_p5), %s445_s22, 4294967168  ;;  %s453_s19 = sand.u32 1, %s1337_s9   ;;  %s457_s14 = scalar_lea.vmem [#allocation5], %s1502_s20 }
  0xa3   : > { %s454_s11 = scalar_lea.sflag [#allocation6], %s453_s19 }
  0xa4   : > { %1206 = dma.done.wait (%p1644_p5), %s454_s11, 256  }
  0xa5   : > { %1208 = vsyncadd (%p1644_p5), %s454_s11, 4294967040  ;;  %s466_s10 = scalar_lea.vmem [#allocation7], %s1502_s20  ;;  %s472_s30 = scalar_lea.sflag [#allocation9], %s453_s19 }
  0xa6   : > { %s475_s21 = scalar_lea.vmem [#allocation8], %s1502_s20 }
  0xa7   : > { %1210 = dma.done.wait (%p1644_p5), %s472_s30, 256  }
  0xa8   : > { %1212 = vsyncadd (%p1644_p5), %s472_s30, 4294967040  ;;  %v593_v0 = vlaneseq  ;;  %p559_p12 = scmp.lt.s32.totalorder %s1240_s29, 0  ;;  %s546_s9 = sand.u32 1, %s1224_s25   ;;  %v602_v4 = vld [vmem:[%s475_s21] sm:$0xff]  ;;  %v618_v9 = vld [vmem:[%s466_s10] sm:$0xff] }
  0xa9   : > { %s867_s1 = sshll.u32 %s1240_s29, 3  ;;  %s858_s8 = sshll.u32 %s546_s9, 5  ;;  %v615_v6 = vld [vmem:[%s457_s14] sm:$0xff]  ;;  %v613_v10 = vld [vmem:[%s448_s15] sm:$0xff] }
  0xaa   : > { %v594_v1 = vshrl.u32 %v593_v0, 7  ;;  %s560_s27 = scalar_select %p559_p12, %s1240_s29, 0  ;;  %v596_v2 = vstv %s867_s1 }
  0xab   : > { %s484_s23 = scalar_lea.vmem [#allocation10], %s1502_s20  ;;  %s548_s11 = scalar_lea.vmem [#allocation11], %s858_s8 }
  0xac   : > { %v597_v3 = vadd.s32 %v596_v2, %v594_v1  ;;  %s1660_s27 = smov (!%p559_p12, %s560_s27), 0  ;;  %v603_v5 = vld [vmem:[%s484_s23] sm:$0xff]  ;;  %s873_s20 = sshll.u32 %s1240_s29, 9 }
  0xad   : > { %s862_s13 = sshll.u32 %s1660_s27, 3  ;;  %v604_v7 = vsub.f32 %v602_v4, %v603_v5  ;;  %s647_s15 = sshll.u32 %s548_s11, 4  ;;  %s1546_s15 = int_to_ptr.vmem [resolvable:$true] %s647_s15 }
  0xae   : > { %vm598_vm0 = vcmp.lt.s32.totalorder %v597_v3, 8  ;;  %s564_s26 = scalar_lea.vmem %s1605_s3, %s862_s13  ;;  %s577_s19 = scalar_lea.vmem %s1607_s5, %s862_s13 }
  0xaf   : > { %v616_v8 = vsel %vm598_vm0, %v615_v6, 0.0  ;;  %v599_v11 = vld [vmem:[%s564_s26] sm:$0xff]  ;;  %v619_v13 = vsel %vm598_vm0, %v618_v9, 0.0  ;;  %v614_v14 = vsel %vm598_vm0, %v613_v10, 0.0  ;;  %v606_v16 = vmul.f32 %v604_v7, %v604_v7  ;;  %s1544_s30 = scalar_lea.hbm %s1609_s7, %s873_s20  ;;  %s1550_s21 = scalar_lea.sflag [#allocation4], %s546_s9 }
  0xb0   : > { %v600_v12 = vld [vmem:[%s577_s19] sm:$0xff]  ;;  %983 = vtanh.f32 %v616_v8  ;;  %624 = vst [vmem:[%s548_s11] sm:$0xff] %v614_v14  ;;  %s1137_s29 = scalar_lea.vmem %s1546_s15, 512  ;;  %p1645_p11 = scmp.ne.s32.totalorder %s1629_s17, 0 }
  0xb1   : > { %v601_v15 = vsub.f32 %v599_v11, %v600_v12  ;;  %985 = vtanh.f32 %v619_v13  ;;  %p1138_p10 = scmp.ne.s32.totalorder %s1546_s15, %s1137_s29  ;;  %s1255_s1 = smov [#allocation11]  }
  0xb2   : > { %s1141_s27 = sshll.u32 %s1255_s1, 4  ;;  %s1142_s27 = int_to_ptr.vmem [resolvable:$false] %s1141_s27 }
  0xb3   : > { %v605_v17 = vmul.f32 %v601_v15, %v601_v15  ;;  %p1139_p1 = pnand %p1138_p10, %p1645_p11  ;;  %s1143_s8 = scalar_lea.vmem %s1142_s27, 1024 }
  0xb4   : > { %p1144_p8 = scmp.lt.s32.totalorder %s1546_s15, %s1142_s27  ;;  %p1145_p13 = scmp.lt.s32.totalorder %s1143_s8, %s1137_s29 }
  0xb5   : > { %v607_v18 = vadd.f32 %v606_v16, %v605_v17  ;;  %p1140_p4 = pneg %p1139_p1 }
  0xb6   : > { %p1146_p6 = por %p1145_p13, %p1144_p8 }
  0xb7   : > { %v608_v19 = vsel %vm598_vm0, %v607_v18, 0.0 }
  0xb8   : > { %612 = vst [vmem:[%s548_s11 + $0x18] sm:$0xff] %v608_v19  ;;  %p1147_p7 = pnand %p1146_p6, %p1140_p4 }
  0xba   : > { %v984_v20 = vpop.eup %983 }
  0xbb   : > { %v986_v21 = vpop.eup %985  ;;  %628 = vst [vmem:[%s548_s11 + $0x8] sm:$0xff] %v984_v20 }
  0xbc   : > { %632 = vst [vmem:[%s548_s11 + $0x10] sm:$0xff] %v986_v21 }
  0xbd   : > { %1150 = shalt.err (!%p1147_p7)
}
  0xbe   : > { %s1151_s9 = scalar_lea.hbm %s1544_s30, 512  ;;  %s1155_s16 = scalar_lea.hbm %s1609_s7, 1024 }
  0xbf   : > { %p1152_p0 = scmp.ne.s32.totalorder %s1544_s30, %s1151_s9  ;;  %p1156_p9 = scmp.lt.u32.totalorder %s1544_s30, %s1609_s7 }
  0xc0   : > { %p1157_p5 = scmp.lt.u32.totalorder %s1155_s16, %s1151_s9  ;;  %p1159_p10 = scmp.lt.u32.totalorder %s1151_s9, %s1544_s30 }
  0xc1   : > { %p1153_p3 = pnand %p1152_p0, %p1645_p11 }
  0xc2   : > { %p1158_p12 = por %p1157_p5, %p1156_p9 }
  0xc3   : > { %p1154_p2 = pneg %p1153_p3 }
  0xc4   : > { %p1160_p1 = por %p1159_p10, %p1158_p12 }
  0xc6   : > { %p1161_p4 = pnand %p1160_p1, %p1154_p2 }
  0xc8   : > { %1164 = shalt.err (!%p1161_p4)
}
  0xc9   : > { %s1256_s12 = smov 128   ;;  %s1257_s22 = smov 8  }
  0xca   : > { %884 = dma.vmem_to_hbm [thread:$0]  (%p1645_p11), %s1546_s15, 512, %s1544_s30, %s1550_s21, %s1256_s12, %s1256_s12, %s1257_s22  }
  0xcb PF: > { %s1646_s19 = sld [smem:[#allocation21_spill]]  ;;  %s1647_s11 = sld [smem:[#allocation18_spill]] }
  0xcc   : > { %s662_s20 = sand.u32 1, %s1220_s24  }
  0xcd   : > { %s663_s14 = scalar_lea.sflag [#allocation4], %s662_s20 }
  0xd1   : > { %p1648_p8 = scmp.ne.s32.totalorder %s1646_s19, 0  ;;  %p1649_p13 = scmp.ge.s32.totalorder %s1647_s11, 2 }
  0xd3   : > { %p903_p6 = pnand %p1649_p13, %p1648_p8 }
  0xd5   : > { %1214 = dma.done.wait (!%p903_p6), %s663_s14, 512  }
  0xd6   : > { %1216 = vsyncadd (!%p903_p6), %s663_s14, 4294966784  ;;  %s29_s8 = sadd.s32 1, %s1647_s11   ;;  %s1650_s10 = sld [smem:[#allocation16_spill]] }
  0xd7   : > { %p26_p7 = scmp.ge.s32.totalorder %s29_s8, 4   ;;  %s1651_s26 = sld [smem:[#allocation20_spill]] }
  0xd8   : > { %s1652_s29 = sld [smem:[#allocation17_spill]]  ;;  %s1653_s30 = sld [smem:[#allocation19_spill]] }
  0xd9   : > { %s1654_s24 = smov %s1224_s25  ;;  %s1656_s27 = smov %s1236_s28 }
  0xda   : > { %s1592_s28 = smov 0   ;;  %28 = sbr.rel (!%p26_p7) target bundleno = 13 (0xd), region = 151 }
  0xdc   : > { %s1655_s25 = smov %s1650_s10 }
  0xe1   :  { %668 = vsyncpa [#allocation3], 1 }
  0xe2   :  { %670 = vsyncpa [#allocation3 + $0x1], 1 }
  0xe3   :  { %671 = vsyncpa [#allocation6], 1 }
  0xe4   :  { %673 = vsyncpa [#allocation6 + $0x1], 1 }
  0xe5   :  { %674 = vsyncpa [#allocation9], 1 }
  0xe6   :  { %676 = vsyncpa [#allocation9 + $0x1], 1 }
  0xe7   :  { %677 = vsyncpa [#allocation4], 1 }
  0xe8   :  { %679 = vsyncpa [#allocation4 + $0x1], 1 }

</bundles_post_ra>
